<compile_context>
chip_gen: v6e
topology: v6e:2x2x1
jax: 0.10.0
libtpu: 0.0.40
codegen_flags: <defaults>
</compile_context>

<pallas_src>
import functools

import jax
import jax.numpy as jnp
from jax.experimental import pallas as pl
from jax.experimental.pallas import tpu as pltpu


def _round_up(x, m):
    return (x + m - 1) // m * m


def _nbytes(shape, dt):
    n = 1
    for s in shape:
        n *= s
    return n * jnp.dtype(dt).itemsize


def _vmem_budget_bytes():
    """Generation-aware VMEM budget (~80% of physical per-TensorCore VMEM)."""
    try:
        cap = int(pltpu.get_tpu_info().vmem_capacity_bytes)
    except Exception:
        cap = 64 << 20          # conservative fallback = v7x per-TC VMEM
    return int(cap * 0.8)


# ---------------------------------------------------------------------------
# Kernels
# ---------------------------------------------------------------------------
def fnn_kernel_resident(x_ref, w1_ref, b1_ref, w2_ref, b2_ref, o_ref):
    # x_ref : [TILE_B, In]     original dtype (cast to compute dtype in-kernel)
    # w1_ref: [In, Hid_p]      compute dtype, VMEM-resident (Buffered(1))
    # b1_ref: [1, Hid_p]       f32
    # w2_ref: [Hid_p, Out_p]   compute dtype, VMEM-resident
    # b2_ref: [1, Out_p]       f32
    # o_ref : [TILE_B, Out_p]
    x = x_ref[...].astype(w1_ref.dtype)                       # free VPU cast under DMA
    h = jnp.dot(x, w1_ref[...], preferred_element_type=jnp.float32)
    h = jnp.maximum(h + b1_ref[...], 0.0)                     # bias + ReLU in f32
    y = jnp.dot(h.astype(w2_ref.dtype), w2_ref[...],
                preferred_element_type=jnp.float32)
    o_ref[...] = (y + b2_ref[...]).astype(o_ref.dtype)


def fnn_kernel_ktiled(x_ref, w1_ref, b1_ref, w2_ref, b2_ref, o_ref, acc_ref):
    # Reduction over the In dimension (grid axis 1, "arbitrary").
    k = pl.program_id(1)

    @pl.when(k == 0)
    def _():
        acc_ref[...] = jnp.zeros_like(acc_ref)

    x = x_ref[...].astype(w1_ref.dtype)
    acc_ref[...] += jnp.dot(x, w1_ref[...], preferred_element_type=jnp.float32)

    @pl.when(k == pl.num_programs(1) - 1)
    def _():
        h = jnp.maximum(acc_ref[...] + b1_ref[...], 0.0)
        y = jnp.dot(h.astype(w2_ref.dtype), w2_ref[...],
                    preferred_element_type=jnp.float32)
        o_ref[...] = (y + b2_ref[...]).astype(o_ref.dtype)


# ---------------------------------------------------------------------------
# Wrapper
# ---------------------------------------------------------------------------
def fnn_forward(x, w1, b1, w2, b2, *, compute_dtype=jnp.bfloat16,
                tile_b=1024, tile_k=512, force_ktiled=False):
    """x: [B, C, H, W] (or already [B, In]); returns [B, Out] in x's dtype."""
    B = x.shape[0]
    x2d = x.reshape(B, -1)                                   # == torch x.view(B, -1)
    In = x2d.shape[1]
    Hid = w1.shape[1]
    Out = w2.shape[1]
    x_dtype = x2d.dtype
    out_dtype = x2d.dtype

    Hid_p = _round_up(Hid, 128)
    Out_p = _round_up(Out, 128)                              # lane-dense output stores

    budget = _vmem_budget_bytes()

    # --- choose resident-weights vs K-tiled path -----------------------------------
    resident_w_bytes = (_nbytes((In, Hid_p), compute_dtype)
                        + _nbytes((Hid_p, Out_p), compute_dtype))
    use_ktiled = force_ktiled or (resident_w_bytes > int(0.6 * budget))

    TILE_K = min(_round_up(tile_k, 128), _round_up(In, 128))

    def est_vmem(tb):
        common = (_nbytes((1, Hid_p), jnp.float32)
                  + _nbytes((1, Out_p), jnp.float32)
                  + 2 * _nbytes((tb, Out_p), out_dtype)          # out double-buffered
                  + _nbytes((tb, Hid_p), jnp.float32)            # h / acc
                  + _nbytes((tb, Hid_p), compute_dtype)          # h recast
                  + _nbytes((tb, Out_p), jnp.float32))           # y
        if use_ktiled:
            return (common
                    + 2 * _nbytes((tb, TILE_K), x_dtype)         # x double-buffered
                    + _nbytes((tb, TILE_K), compute_dtype)       # x cast
                    + 2 * _nbytes((TILE_K, Hid_p), compute_dtype)  # w1 slab d-buffered
                    + _nbytes((Hid_p, Out_p), compute_dtype))    # w2 resident
        return (common
                + 2 * _nbytes((tb, In), x_dtype)                 # x double-buffered
                + _nbytes((tb, In), compute_dtype)               # x cast
                + _nbytes((In, Hid_p), compute_dtype)            # w1 resident (1 buf)
                + _nbytes((Hid_p, Out_p), compute_dtype))        # w2 resident (1 buf)

    # Batch tile: as large as the VMEM budget allows (per-grid-step overhead ~0.35us);
    # tiny batches rounded to 16 rows = bf16 packed-sublane size.
    TILE_B = _round_up(min(tile_b, B), 16)
    while est_vmem(TILE_B) > budget and TILE_B > 16:
        TILE_B = max(16, TILE_B // 2)

    B_p = _round_up(B, TILE_B)
    In_p = _round_up(In, TILE_K) if use_ktiled else In

    # x keeps its original dtype (cast happens in-kernel); pad only if required.
    if (B_p != B) or (In_p != In):
        x2d = jnp.pad(x2d, ((0, B_p - B), (0, In_p - In)))

    # Weights/biases: small one-time casts (zero padding is exact).
    w1c = jnp.pad(w1, ((0, In_p - In), (0, Hid_p - Hid))).astype(compute_dtype)
    w2c = jnp.pad(w2, ((0, Hid_p - Hid), (0, Out_p - Out))).astype(compute_dtype)
    b1c = jnp.pad(b1, (0, Hid_p - Hid)).astype(jnp.float32).reshape(1, Hid_p)
    b2c = jnp.pad(b2, (0, Out_p - Out)).astype(jnp.float32).reshape(1, Out_p)

    vmem_limit = min(budget, max(32 << 20, int(est_vmem(TILE_B) * 1.5) + (4 << 20)))

    cost = pl.CostEstimate(
        flops=2 * B_p * (In_p * Hid_p + Hid_p * Out_p),
        transcendentals=0,
        bytes_accessed=(x2d.size * x2d.dtype.itemsize
                        + w1c.size * w1c.dtype.itemsize
                        + w2c.size * w2c.dtype.itemsize
                        + b1c.size * 4 + b2c.size * 4
                        + B_p * Out_p * jnp.dtype(out_dtype).itemsize),
    )

    # VMEM-resident (single-buffered) spec for constant-index operands.
    resident = functools.partial(pl.BlockSpec, pipeline_mode=pl.Buffered(1))

    if use_ktiled:
        grid = (B_p // TILE_B, In_p // TILE_K)
        grid_spec = pltpu.PrefetchScalarGridSpec(
            num_scalar_prefetch=0,
            grid=grid,
            in_specs=[
                pl.BlockSpec((TILE_B, TILE_K), lambda i, k: (i, k)),   # x tile
                pl.BlockSpec((TILE_K, Hid_p), lambda i, k: (k, 0)),    # w1 K-slab
                resident((1, Hid_p), lambda i, k: (0, 0)),             # b1 resident
                resident((Hid_p, Out_p), lambda i, k: (0, 0)),         # w2 resident
                resident((1, Out_p), lambda i, k: (0, 0)),             # b2 resident
            ],
            out_specs=pl.BlockSpec((TILE_B, Out_p), lambda i, k: (i, 0)),
            scratch_shapes=[pltpu.VMEM((TILE_B, Hid_p), jnp.float32)],
        )
        kernel = fnn_kernel_ktiled
        dim_sem = ("parallel", "arbitrary")
    else:
        grid = (B_p // TILE_B,)
        grid_spec = pltpu.PrefetchScalarGridSpec(
            num_scalar_prefetch=0,
            grid=grid,
            in_specs=[
                pl.BlockSpec((TILE_B, In_p), lambda i: (i, 0)),        # x: batch tiles
                resident((In_p, Hid_p), lambda i: (0, 0)),             # w1 resident
                resident((1, Hid_p), lambda i: (0, 0)),                # b1 resident
                resident((Hid_p, Out_p), lambda i: (0, 0)),            # w2 resident
                resident((1, Out_p), lambda i: (0, 0)),                # b2 resident
            ],
            out_specs=pl.BlockSpec((TILE_B, Out_p), lambda i: (i, 0)),
        )
        kernel = fnn_kernel_resident
        dim_sem = ("parallel",)

    out_padded = pl.pallas_call(
        kernel,
        out_shape=jax.ShapeDtypeStruct((B_p, Out_p), out_dtype),
        grid_spec=grid_spec,
        compiler_params=pltpu.CompilerParams(
            dimension_semantics=dim_sem,
            vmem_limit_bytes=vmem_limit,
        ),
        cost_estimate=cost,
    )(x2d, w1c, b1c, w2c, b2c)

    return out_padded[:B, :Out]


def init_params(key, input_size, hidden_size, output_size, dtype=jnp.float32):
    """Deterministic init matching nn.Linear's U(-1/sqrt(fan_in), +1/sqrt(fan_in))."""
    k1, k2, k3, k4 = jax.random.split(key, 4)
    lim1 = 1.0 / jnp.sqrt(jnp.float32(input_size))
    lim2 = 1.0 / jnp.sqrt(jnp.float32(hidden_size))
    w1 = jax.random.uniform(k1, (input_size, hidden_size), dtype, -lim1, lim1)
    b1 = jax.random.uniform(k2, (hidden_size,), dtype, -lim1, lim1)
    w2 = jax.random.uniform(k3, (hidden_size, output_size), dtype, -lim2, lim2)
    b2 = jax.random.uniform(k4, (output_size,), dtype, -lim2, lim2)
    return w1, b1, w2, b2


if __name__ == "__main__":
    key = jax.random.PRNGKey(0)
    kx, kp = jax.random.split(key)

    # Small shapes consistent with forward(): NCHW input, flattened to input_size.
    B, C, H, W = 2, 4, 16, 16
    input_size = C * H * W                      # 1024
    hidden_size = 32
    output_size = 8

    x = jax.random.normal(kx, (B, C, H, W), dtype=jnp.float32)
    w1, b1, w2, b2 = init_params(kp, input_size, hidden_size, output_size)

    # Plain-JAX reference mirroring the kernel's mixed precision
    # (bf16 operands, f32 accumulation, f32 bias/ReLU, bf16 recast before fc2).
    x2d = x.reshape(B, -1)
    xb = x2d.astype(jnp.bfloat16)
    h = jnp.dot(xb, w1.astype(jnp.bfloat16), preferred_element_type=jnp.float32) + b1
    h = jnp.maximum(h, 0.0)
    ref = (jnp.dot(h.astype(jnp.bfloat16), w2.astype(jnp.bfloat16),
                   preferred_element_type=jnp.float32) + b2).astype(x2d.dtype)

    # Path 1: weights-resident (common case).
    out = jax.block_until_ready(fnn_forward(x, w1, b1, w2, b2))
    assert out.shape == (B, output_size)
    assert jnp.allclose(out, ref, atol=1e-3, rtol=1e-3), "resident path mismatch"

    # Path 2: K-tiled accumulator fallback (the large-weight / v7x path), exercised
    # explicitly so both code paths are validated on hardware.
    out_kt = jax.block_until_ready(fnn_forward(x, w1, b1, w2, b2, force_ktiled=True))
    assert out_kt.shape == (B, output_size)
    assert jnp.allclose(out_kt, ref, atol=1e-3, rtol=1e-3), "k-tiled path mismatch"

    print("KERNEL_OK")
</pallas_src>

<mosaic_0001>
module attributes {stable_mosaic.version = 11 : i64} {
  func.func @fnn_kernel_resident(%arg0: i32, %arg1: memref<16x1024xf32, #tpu.memory_space<vmem>>, %arg2: memref<1024x128xbf16, #tpu.memory_space<vmem>>, %arg3: memref<1x128xf32, #tpu.memory_space<vmem>>, %arg4: memref<128x128xbf16, #tpu.memory_space<vmem>>, %arg5: memref<1x128xf32, #tpu.memory_space<vmem>>, %arg6: memref<16x128xf32, #tpu.memory_space<vmem>>) attributes {dimension_semantics = [#tpu.dimension_semantics<parallel>], iteration_bounds = array<i64: 1>, scalar_prefetch = 0 : i64, scratch_operands = 0 : i64, tpu.core_type = #tpu.core_type<tc>, window_params = [{transform_indices = @transform_0, window_bounds = array<i64: 16, 1024>}, {pipeline_mode = #tpu.pipeline_mode<synchronous>, transform_indices = @transform_1, window_bounds = array<i64: 1024, 128>}, {pipeline_mode = #tpu.pipeline_mode<synchronous>, transform_indices = @transform_2, window_bounds = array<i64: 1, 128>}, {pipeline_mode = #tpu.pipeline_mode<synchronous>, transform_indices = @transform_3, window_bounds = array<i64: 128, 128>}, {pipeline_mode = #tpu.pipeline_mode<synchronous>, transform_indices = @transform_4, window_bounds = array<i64: 1, 128>}, {transform_indices = @transform_5, window_bounds = array<i64: 16, 128>}]} {
    %c0 = arith.constant 0 : index
    %c0_0 = arith.constant 0 : index
    %0 = vector.load %arg1[%c0, %c0_0] : memref<16x1024xf32, #tpu.memory_space<vmem>>, vector<16x1024xf32>
    %1 = arith.truncf %0 : vector<16x1024xf32> to vector<16x1024xbf16>
    %c0_1 = arith.constant 0 : index
    %c0_2 = arith.constant 0 : index
    %2 = vector.load %arg2[%c0_1, %c0_2] : memref<1024x128xbf16, #tpu.memory_space<vmem>>, vector<1024x128xbf16>
    %cst = arith.constant dense<0.000000e+00> : vector<16x128xf32>
    %3 = tpu.matmul %1, %2, %cst {dimension_numbers = #tpu.dot_dimension_numbers<[1], [0], [0], [1], [0, 0, 1, 1], [], []>} : vector<16x1024xbf16>, vector<1024x128xbf16>, vector<16x128xf32> -> vector<16x128xf32>
    %c0_3 = arith.constant 0 : index
    %c0_4 = arith.constant 0 : index
    %4 = vector.load %arg3[%c0_3, %c0_4] : memref<1x128xf32, #tpu.memory_space<vmem>>, vector<1x128xf32>
    %5 = vector.broadcast %4 : vector<1x128xf32> to vector<16x128xf32>
    %6 = arith.addf %3, %5 : vector<16x128xf32>
    %cst_5 = arith.constant 0.000000e+00 : f32
    %7 = vector.broadcast %cst_5 : f32 to vector<16x128xf32>
    %8 = arith.maximumf %6, %7 : vector<16x128xf32>
    %9 = arith.truncf %8 : vector<16x128xf32> to vector<16x128xbf16>
    %c0_6 = arith.constant 0 : index
    %c0_7 = arith.constant 0 : index
    %10 = vector.load %arg4[%c0_6, %c0_7] : memref<128x128xbf16, #tpu.memory_space<vmem>>, vector<128x128xbf16>
    %cst_8 = arith.constant dense<0.000000e+00> : vector<16x128xf32>
    %11 = tpu.matmul %9, %10, %cst_8 {dimension_numbers = #tpu.dot_dimension_numbers<[1], [0], [0], [1], [0, 0, 1, 1], [], []>} : vector<16x128xbf16>, vector<128x128xbf16>, vector<16x128xf32> -> vector<16x128xf32>
    %c0_9 = arith.constant 0 : index
    %c0_10 = arith.constant 0 : index
    %12 = vector.load %arg5[%c0_9, %c0_10] : memref<1x128xf32, #tpu.memory_space<vmem>>, vector<1x128xf32>
    %13 = vector.broadcast %12 : vector<1x128xf32> to vector<16x128xf32>
    %14 = arith.addf %11, %13 : vector<16x128xf32>
    %c0_11 = arith.constant 0 : index
    %c0_12 = arith.constant 0 : index
    %15 = vector.load %arg6[%c0_11, %c0_12] : memref<16x128xf32, #tpu.memory_space<vmem>>, vector<16x128xf32>
    tpu.vector_store %arg6[%c0_11, %c0_12], %14 {strides = array<i32>} : memref<16x128xf32, #tpu.memory_space<vmem>>, vector<16x128xf32>,
    return
  }
  func.func @transform_0(%arg0: i32) -> (i32, i32) {
    %c0_i32 = arith.constant 0 : i32
    %c0_i32_0 = arith.constant 0 : i32
    return %arg0, %c0_i32 : i32, i32
  }
  func.func @transform_1(%arg0: i32) -> (i32, i32) {
    %c0_i32 = arith.constant 0 : i32
    %c0_i32_0 = arith.constant 0 : i32
    %c0_i32_1 = arith.constant 0 : i32
    return %c0_i32, %c0_i32_0 : i32, i32
  }
  func.func @transform_2(%arg0: i32) -> (i32, i32) {
    %c0_i32 = arith.constant 0 : i32
    %c0_i32_0 = arith.constant 0 : i32
    %c0_i32_1 = arith.constant 0 : i32
    return %c0_i32, %c0_i32_0 : i32, i32
  }
  func.func @transform_3(%arg0: i32) -> (i32, i32) {
    %c0_i32 = arith.constant 0 : i32
    %c0_i32_0 = arith.constant 0 : i32
    %c0_i32_1 = arith.constant 0 : i32
    return %c0_i32, %c0_i32_0 : i32, i32
  }
  func.func @transform_4(%arg0: i32) -> (i32, i32) {
    %c0_i32 = arith.constant 0 : i32
    %c0_i32_0 = arith.constant 0 : i32
    %c0_i32_1 = arith.constant 0 : i32
    return %c0_i32, %c0_i32_0 : i32, i32
  }
  func.func @transform_5(%arg0: i32) -> (i32, i32) {
    %c0_i32 = arith.constant 0 : i32
    %c0_i32_0 = arith.constant 0 : i32
    return %arg0, %c0_i32 : i32, i32
  }
}

</mosaic_0001>

<bundles_post_ra>
// kernel: tpu_custom_call.1
= control target key start
LH: loop header
LB: loop body
LE: loop exit
PB: predicated region body
PF: predicated region fallthrough
CT: control target
= control target key end

     0   :  { %10 = vsyncpa [#allocation3], 0  ;;  %s1324_s0 = inlined_call_operand.hbm [shape: f32[16,1024], index: 0, kind: input, shape index: {}]   ;;  %s1325_s1 = inlined_call_operand.hbm [shape: bf16[1024,128], index: 1, kind: input, shape index: {}]   ;;  %s1326_s2 = inlined_call_operand.vmem [shape: f32[1,128], index: 2, kind: input, shape index: {}]   ;;  %s1327_s3 = inlined_call_operand.hbm [shape: bf16[128,128], index: 3, kind: input, shape index: {}]   ;;  %s1328_s4 = inlined_call_operand.vmem [shape: f32[1,128], index: 4, kind: input, shape index: {}]   ;;  %s1329_s5 = inlined_call_operand.hbm [shape: f32[16,128], index: 5, kind: output, shape index: {}]  }
   0x1   :  { %11 = vsyncpa [#allocation6], 0 }
   0x2   :  { %12 = vsyncpa [#allocation4], 0  ;;  %s1265_s18 = smov [#allocation5]  }
   0x3   :  { %s30_s19 = sshll.u32 %s1265_s18, 4  ;;  %s31_s19 = int_to_ptr.vmem [resolvable:$true] %s30_s19 }
   0x4   :  { %s1187_s20 = scalar_lea.vmem %s31_s19, 8192  ;;  %p1192_p1 = scmp.lt.s32.totalorder %s31_s19, %s31_s19 }
   0x5   :  { %p1188_p0 = scmp.ne.s32.totalorder %s31_s19, %s1187_s20  ;;  %p1193_p2 = scmp.lt.s32.totalorder %s1187_s20, %s1187_s20 }
   0x7   :  { %p1194_p3 = por %p1193_p2, %p1192_p1 }
   0x9   :  { %p1195_p4 = pnand %p1194_p3, %p1188_p0 }
   0xb   :  { %1198 = shalt.err (!%p1195_p4)
}
   0xc   :  { %s1266_s21 = smov 64   ;;  %s1267_s22 = smov 4  }
   0xd   :  { %36 = dma.hbm_to_vmem [thread:$0]  %s1325_s1, 8192, %s31_s19, [#allocation6], %s1266_s21, %s1266_s21, %s1267_s22  }
   0xe   :  { %s1268_s25 = smov [#allocation2]  }
   0xf   :  { %s18_s26 = sshll.u32 %s1268_s25, 4  ;;  %s19_s26 = int_to_ptr.vmem [resolvable:$true] %s18_s26 }
  0x10   :  { %s1207_s27 = scalar_lea.vmem %s19_s26, 2048  ;;  %p1212_p6 = scmp.lt.s32.totalorder %s19_s26, %s19_s26 }
  0x11   :  { %p1208_p5 = scmp.ne.s32.totalorder %s19_s26, %s1207_s27  ;;  %p1213_p7 = scmp.lt.s32.totalorder %s1207_s27, %s1207_s27 }
  0x13   :  { %p1214_p8 = por %p1213_p7, %p1212_p6 }
  0x15   :  { %p1215_p9 = pnand %p1214_p8, %p1208_p5 }
  0x17   :  { %1218 = shalt.err (!%p1215_p9)
}
  0x18   :  { %s1269_s28 = smov 1024   ;;  %s1270_s6 = smov [#allocation7]  }
  0x19   :  { %24 = dma.hbm_to_vmem [thread:$0]  %s1324_s0, 2048, %s19_s26, [#allocation3], %s1269_s28, %s1269_s28, %s1266_s21  }
  0x1a   :  { %s44_s7 = sshll.u32 %s1270_s6, 4  ;;  %s45_s7 = int_to_ptr.vmem [resolvable:$true] %s44_s7 }
  0x1b   :  { %s1227_s8 = scalar_lea.vmem %s45_s7, 1024  ;;  %p1232_p11 = scmp.lt.s32.totalorder %s45_s7, %s45_s7 }
  0x1c   :  { %p1228_p10 = scmp.ne.s32.totalorder %s45_s7, %s1227_s8  ;;  %p1233_p12 = scmp.lt.s32.totalorder %s1227_s8, %s1227_s8 }
  0x1e   :  { %p1234_p13 = por %p1233_p12, %p1232_p11 }
  0x20   :  { %p1235_p0 = pnand %p1234_p13, %p1228_p10 }
  0x22   :  { %1238 = shalt.err (!%p1235_p0)
}
  0x23   :  { %50 = dma.hbm_to_vmem [thread:$0]  %s1327_s3, 1024, %s45_s7, [#allocation6], %s1266_s21, %s1266_s21, %s1267_s22  }
  0x24   :  { %1259 = dma.done.wait [#allocation3], 2048  }
  0x25   :  { %1260 = vsyncadd [#allocation3], 4294965248 }
  0x26   :  { %1261 = dma.done.wait [#allocation6], 9216  }
  0x27   :  { %1262 = vsyncadd [#allocation6], 4294958080  ;;  %v1107_v0 = vld [vmem:[#allocation5 + $0x78] sm:$0xff]   ;;  %v1111_v4 = vld [vmem:[#allocation5 + $0x70] sm:$0xff]   ;;  %vm1272_vm0 = vmmov 0   ;;  %s1273_s11 = smov [#allocation8]  }
  0x28   :  { %v1108_v1 = vld [vmem:[#allocation5 + $0xf8] sm:$0xff]   ;;  %979 = vmatprep.subr.bf16.mxu0 %v1107_v0  ;;  %v1112_v5 = vld [vmem:[#allocation5 + $0xf0] sm:$0xff]   ;;  %v1115_v8 = vld [vmem:[#allocation5 + $0x68] sm:$0xff]   ;;  %s892_s12 = sshll.u32 %s1273_s11, 4  ;;  %s893_s12 = int_to_ptr.vmem [resolvable:$true] %s892_s12 }
  0x29   :  { %v1109_v2 = vld [vmem:[#allocation5 + $0x38] sm:$0xff]   ;;  %1001 = vmatprep.subr.bf16.mxu1 %v1108_v1  ;;  %v1113_v6 = vld [vmem:[#allocation5 + $0x30] sm:$0xff]   ;;  %v1116_v9 = vld [vmem:[#allocation5 + $0xe8] sm:$0xff]   ;;  %s1239_s13 = scalar_lea.vmem %s893_s12, 256  ;;  %p1244_p2 = scmp.lt.s32.totalorder %s893_s12, %s893_s12 }
  0x2a   :  { %v1110_v3 = vld [vmem:[#allocation5 + $0xb8] sm:$0xff]   ;;  %980 = vmatpush3.bf16.msra.mxu0 %v1109_v2  ;;  %v1114_v7 = vld [vmem:[#allocation5 + $0xb0] sm:$0xff]   ;;  %v1117_v10 = vld [vmem:[#allocation5 + $0x28] sm:$0xff]   ;;  %p1240_p1 = scmp.ne.s32.totalorder %s893_s12, %s1239_s13  ;;  %p1245_p3 = scmp.lt.s32.totalorder %s1239_s13, %s1239_s13 }
  0x2b   :  { %1002 = vmatpush3.bf16.msra.mxu1 %v1110_v3  ;;  %981 = vmatprep.subr.bf16.mxu0 %v1111_v4  ;;  %v1118_v11 = vld [vmem:[#allocation5 + $0xa8] sm:$0xff]   ;;  %v1119_v12 = vld [vmem:[#allocation5 + $0x60] sm:$0xff]   ;;  %v1123_v16 = vld [vmem:[#allocation5 + $0x58] sm:$0xff]  }
  0x2c   :  { %1003 = vmatprep.subr.bf16.mxu1 %v1112_v5  ;;  %v1120_v13 = vld [vmem:[#allocation5 + $0xe0] sm:$0xff]   ;;  %v1124_v17 = vld [vmem:[#allocation5 + $0xd8] sm:$0xff]   ;;  %v1127_v20 = vld [vmem:[#allocation5 + $0x50] sm:$0xff]   ;;  %p1246_p4 = por %p1245_p3, %p1244_p2 }
  0x2d   :  { %v1121_v14 = vld [vmem:[#allocation5 + $0x20] sm:$0xff]   ;;  %v1125_v18 = vld [vmem:[#allocation5 + $0x18] sm:$0xff]   ;;  %v1128_v21 = vld [vmem:[#allocation5 + $0xd0] sm:$0xff]  }
  0x2e   :  { %982 = vmatpush3.bf16.msra.mxu0 %v1113_v6  ;;  %v1122_v15 = vld [vmem:[#allocation5 + $0xa0] sm:$0xff]   ;;  %v1126_v19 = vld [vmem:[#allocation5 + $0x98] sm:$0xff]   ;;  %v1129_v22 = vld [vmem:[#allocation5 + $0x10] sm:$0xff]   ;;  %p1247_p5 = pnand %p1246_p4, %p1240_p1 }
  0x2f   :  { %1004 = vmatpush3.bf16.msra.mxu1 %v1114_v7  ;;  %983 = vmatprep.subr.bf16.mxu0 %v1115_v8  ;;  %v1130_v23 = vld [vmem:[#allocation5 + $0x90] sm:$0xff]   ;;  %v1131_v24 = vld [vmem:[#allocation5 + $0x48] sm:$0xff]   ;;  %v1135_v28 = vld [vmem:[#allocation5 + $0x40] sm:$0xff]  }
  0x30   :  { %1005 = vmatprep.subr.bf16.mxu1 %v1116_v9  ;;  %v1132_v25 = vld [vmem:[#allocation5 + $0xc8] sm:$0xff]   ;;  %v1136_v29 = vld [vmem:[#allocation5 + $0xc0] sm:$0xff]   ;;  %v66_v34 = vld [vmem:[#allocation2 + $0x18] sm:$0xff] }
  0x31   :  { %v1133_v26 = vld [vmem:[#allocation5 + $0x8] sm:$0xff]   ;;  %v1137_v30 = vld [vmem:[#allocation5] sm:$0xff]   ;;  %v74_v36 = vld [vmem:[#allocation2 + $0x58] sm:$0xff] }
  0x32   :  { %984 = vmatpush3.bf16.msra.mxu0 %v1117_v10  ;;  %v1134_v27 = vld [vmem:[#allocation5 + $0x88] sm:$0xff]   ;;  %v1138_v31 = vld [vmem:[#allocation5 + $0x80] sm:$0xff]   ;;  %v82_v39 = vpack.c.bf16 %v74_v36, %v66_v34  ;;  %v65_v41 = vld [vmem:[#allocation2 + $0x10] sm:$0xff] }
  0x33   :  { %1006 = vmatpush3.bf16.msra.mxu1 %v1118_v11  ;;  %985 = vmatprep.subr.bf16.mxu0 %v1119_v12  ;;  %v64_v32 = vld [vmem:[#allocation2 + $0x8] sm:$0xff]  ;;  %v63_v37 = vld [vmem:[#allocation2] sm:$0xff]  ;;  %v73_v42 = vld [vmem:[#allocation2 + $0x50] sm:$0xff] }
  0x34   :  { %1007 = vmatprep.subr.bf16.mxu1 %v1120_v13  ;;  %v72_v33 = vld [vmem:[#allocation2 + $0x48] sm:$0xff]  ;;  %v71_v38 = vld [vmem:[#allocation2 + $0x40] sm:$0xff]  ;;  %v81_v43 = vpack.c.bf16 %v73_v42, %v65_v41  ;;  %v1139_v44 = vld [vmem:[#allocation5 + $0x178] sm:$0xff]   ;;  %679 = vmatprep.mubr.bf16.mxu1 %v82_v39 }
  0x35   :  { %v80_v35 = vpack.c.bf16 %v72_v33, %v64_v32  ;;  %v79_v40 = vpack.c.bf16 %v71_v38, %v63_v37  ;;  %v1140_v45 = vld [vmem:[#allocation5 + $0x1f8] sm:$0xff]   ;;  %v1143_v48 = vld [vmem:[#allocation5 + $0x170] sm:$0xff]   ;;  %v1147_v52 = vld [vmem:[#allocation5 + $0x168] sm:$0xff]  }
  0x36   :  { %986 = vmatpush3.bf16.msra.mxu0 %v1121_v14  ;;  %v1141_v46 = vld [vmem:[#allocation5 + $0x138] sm:$0xff]   ;;  %v1144_v49 = vld [vmem:[#allocation5 + $0x1f0] sm:$0xff]   ;;  %v1148_v53 = vld [vmem:[#allocation5 + $0x1e8] sm:$0xff]  }
  0x37   :  { %1008 = vmatpush3.bf16.msra.mxu1 %v1122_v15  ;;  %987 = vmatprep.subr.bf16.mxu0 %v1123_v16  ;;  %v1142_v47 = vld [vmem:[#allocation5 + $0x1b8] sm:$0xff]   ;;  %v1145_v50 = vld [vmem:[#allocation5 + $0x130] sm:$0xff]   ;;  %v1149_v54 = vld [vmem:[#allocation5 + $0x128] sm:$0xff]  }
  0x38   :  { %1009 = vmatprep.subr.bf16.mxu1 %v1124_v17  ;;  %638 = vmatprep.mubr.bf16.mxu0 %v80_v35  ;;  %v1146_v51 = vld [vmem:[#allocation5 + $0x1b0] sm:$0xff]   ;;  %v1150_v55 = vld [vmem:[#allocation5 + $0x1a8] sm:$0xff]   ;;  %v1151_v56 = vld [vmem:[#allocation5 + $0x160] sm:$0xff]  }
  0x39   :  { %v1152_v57 = vld [vmem:[#allocation5 + $0x1e0] sm:$0xff]   ;;  %v1155_v60 = vld [vmem:[#allocation5 + $0x158] sm:$0xff]   ;;  %v1159_v0 = vld [vmem:[#allocation5 + $0x150] sm:$0xff]  }
  0x3a   :  { %988 = vmatpush3.bf16.msra.mxu0 %v1125_v18  ;;  %v1153_v58 = vld [vmem:[#allocation5 + $0x120] sm:$0xff]   ;;  %v1156_v61 = vld [vmem:[#allocation5 + $0x1d8] sm:$0xff]   ;;  %v1160_v1 = vld [vmem:[#allocation5 + $0x1d0] sm:$0xff]  }
  0x3b   :  { %1010 = vmatpush3.bf16.msra.mxu1 %v1126_v19  ;;  %989 = vmatprep.subr.bf16.mxu0 %v1127_v20  ;;  %v1154_v59 = vld [vmem:[#allocation5 + $0x1a0] sm:$0xff]   ;;  %v1157_v62 = vld [vmem:[#allocation5 + $0x118] sm:$0xff]   ;;  %v1161_v2 = vld [vmem:[#allocation5 + $0x110] sm:$0xff]  }
  0x3c   :  { %1011 = vmatprep.subr.bf16.mxu1 %v1128_v21  ;;  %v1158_v63 = vld [vmem:[#allocation5 + $0x198] sm:$0xff]   ;;  %v1162_v3 = vld [vmem:[#allocation5 + $0x190] sm:$0xff]   ;;  %v1163_v4 = vld [vmem:[#allocation5 + $0x148] sm:$0xff]  }
  0x3d   :  { %v1164_v5 = vld [vmem:[#allocation5 + $0x1c8] sm:$0xff]   ;;  %v1167_v8 = vld [vmem:[#allocation5 + $0x140] sm:$0xff]   ;;  %v70_v14 = vld [vmem:[#allocation2 + $0x38] sm:$0xff] }
  0x3e   :  { %990 = vmatpush3.bf16.msra.mxu0 %v1129_v22  ;;  %v1165_v6 = vld [vmem:[#allocation5 + $0x108] sm:$0xff]   ;;  %v1168_v9 = vld [vmem:[#allocation5 + $0x1c0] sm:$0xff]   ;;  %v78_v15 = vld [vmem:[#allocation2 + $0x78] sm:$0xff] }
  0x3f   :  { %1012 = vmatpush3.bf16.msra.mxu1 %v1130_v23  ;;  %991 = vmatprep.subr.bf16.mxu0 %v1131_v24  ;;  %v1166_v7 = vld [vmem:[#allocation5 + $0x188] sm:$0xff]   ;;  %v1169_v10 = vld [vmem:[#allocation5 + $0x100] sm:$0xff]   ;;  %v86_v17 = vpack.c.bf16 %v78_v15, %v70_v14  ;;  %v69_v20 = vld [vmem:[#allocation2 + $0x30] sm:$0xff] }
  0x40   :  { %1013 = vmatprep.subr.bf16.mxu1 %v1132_v25  ;;  %v1170_v11 = vld [vmem:[#allocation5 + $0x180] sm:$0xff]   ;;  %v68_v12 = vld [vmem:[#allocation2 + $0x28] sm:$0xff]  ;;  %v77_v22 = vld [vmem:[#allocation2 + $0x70] sm:$0xff]  ;;  %v1271_v25 = vmov 0.0  }
  0x41   :  { %v76_v13 = vld [vmem:[#allocation2 + $0x68] sm:$0xff]  ;;  %v67_v18 = vld [vmem:[#allocation2 + $0x20] sm:$0xff]  ;;  %v85_v23 = vpack.c.bf16 %v77_v22, %v69_v20  ;;  %v1171_v24 = vld [vmem:[#allocation7 + $0x38] sm:$0xff]  }
  0x42   :  { %992 = vmatpush3.bf16.msra.mxu0 %v1133_v26  ;;  %v84_v16 = vpack.c.bf16 %v76_v13, %v68_v12  ;;  %v75_v19 = vld [vmem:[#allocation2 + $0x60] sm:$0xff]  ;;  %v1172_v26 = vld [vmem:[#allocation7 + $0x30] sm:$0xff]  }
  0x43   :  { %1014 = vmatpush3.bf16.msra.mxu1 %v1134_v27  ;;  %993 = vmatprep.subr.bf16.mxu0 %v1135_v28  ;;  %v83_v21 = vpack.c.bf16 %v75_v19, %v67_v18  ;;  %v1173_v27 = vld [vmem:[#allocation7 + $0x28] sm:$0xff]   ;;  %v1174_v28 = vld [vmem:[#allocation7 + $0x20] sm:$0xff]  }
  0x44   :  { %1015 = vmatprep.subr.bf16.mxu1 %v1136_v29  ;;  %v1175_v29 = vld [vmem:[#allocation7 + $0x18] sm:$0xff]   ;;  %v1178_v32 = vld [vmem:[#allocation7] sm:$0xff]  }
  0x46   :  { %994 = vmatpush3.bf16.msra.mxu0 %v1137_v30  ;;  %v1176_v30 = vld [vmem:[#allocation7 + $0x10] sm:$0xff]  }
  0x47   :  { %1016 = vmatpush3.bf16.msra.mxu1 %v1138_v31  ;;  %1023 = vmatprep.subr.bf16.mxu0 %v1139_v44  ;;  %v1177_v31 = vld [vmem:[#allocation7 + $0x8] sm:$0xff]  }
  0x48   :  { %1045 = vmatprep.subr.bf16.mxu1 %v1140_v45 }
  0x49   :  { %639 = vmatmul.mubr.bf16.vlgmr.msra.gmra.mxu0 %v79_v40  ;;  %v905_v40 = vld [vmem:[%s1326_s2] ss:$0 sm:$0xff] }
  0x4a   :  { %680 = vmatmul.mubr.bf16.vlgmr.msra.gmra.mxu1 %v81_v43  ;;  %1024 = vmatpush3.bf16.msra.mxu0 %v1141_v46 }
  0x4b   :  { %1046 = vmatpush3.bf16.msra.mxu1 %v1142_v47  ;;  %1025 = vmatprep.subr.bf16.mxu0 %v1143_v48 }
  0x4c   :  { %1047 = vmatprep.subr.bf16.mxu1 %v1144_v49  ;;  %720 = vmatprep.mubr.bf16.mxu0 %v84_v16 }
  0x4d   :  { %761 = vmatprep.mubr.bf16.mxu1 %v86_v17 }
  0x4e   :  { %1026 = vmatpush3.bf16.msra.mxu0 %v1145_v50 }
  0x4f   :  { %1048 = vmatpush3.bf16.msra.mxu1 %v1146_v51  ;;  %1027 = vmatprep.subr.bf16.mxu0 %v1147_v52 }
  0x50   :  { %1049 = vmatprep.subr.bf16.mxu1 %v1148_v53 }
  0x52   :  { %1028 = vmatpush3.bf16.msra.mxu0 %v1149_v54 }
  0x53   :  { %1050 = vmatpush3.bf16.msra.mxu1 %v1150_v55  ;;  %1029 = vmatprep.subr.bf16.mxu0 %v1151_v56 }
  0x54   :  { %1051 = vmatprep.subr.bf16.mxu1 %v1152_v57 }
  0x56   :  { %1030 = vmatpush3.bf16.msra.mxu0 %v1153_v58 }
  0x57   :  { %1052 = vmatpush3.bf16.msra.mxu1 %v1154_v59  ;;  %1031 = vmatprep.subr.bf16.mxu0 %v1155_v60 }
  0x58   :  { %1053 = vmatprep.subr.bf16.mxu1 %v1156_v61 }
  0x5a   :  { %1032 = vmatpush3.bf16.msra.mxu0 %v1157_v62 }
  0x5b   :  { %1054 = vmatpush3.bf16.msra.mxu1 %v1158_v63  ;;  %1033 = vmatprep.subr.bf16.mxu0 %v1159_v0 }
  0x5c   :  { %1055 = vmatprep.subr.bf16.mxu1 %v1160_v1 }
  0x5e   :  { %1034 = vmatpush3.bf16.msra.mxu0 %v1161_v2 }
  0x5f   :  { %1056 = vmatpush3.bf16.msra.mxu1 %v1162_v3  ;;  %1035 = vmatprep.subr.bf16.mxu0 %v1163_v4 }
  0x60   :  { %1057 = vmatprep.subr.bf16.mxu1 %v1164_v5  ;;  %v970_v5 = vld [vmem:[%s1328_s4] ss:$0 sm:$0xff] }
  0x62   :  { %1036 = vmatpush3.bf16.msra.mxu0 %v1165_v6 }
  0x63   :  { %1058 = vmatpush3.bf16.msra.mxu1 %v1166_v7  ;;  %1037 = vmatprep.subr.bf16.mxu0 %v1167_v8 }
  0x64   :  { %1059 = vmatprep.subr.bf16.mxu1 %v1168_v9 }
  0x66   :  { %1038 = vmatpush3.bf16.msra.mxu0 %v1169_v10 }
  0x67   :  { %1060 = vmatpush3.bf16.msra.mxu1 %v1170_v11  ;;  %1076 = vmatprep.subr.bf16.mxu0 %v1271_v25 }
  0x69   :  { %721 = vmatmul.mubr.bf16.vlgmr.msra.gmra.mxu0 %v83_v21 }
  0x6a   :  { %762 = vmatmul.mubr.bf16.vlgmr.msra.gmra.mxu1 %v85_v23  ;;  %1077 = vmatpush3.bf16.msra.mxu0 %v1171_v24 }
  0x6b   :  { %1078 = vmatprep.subr.bf16.mxu0 %v1271_v25  ;;  %1092 = vmatprep.mubr.msk.bf16.mxu0 %vm1272_vm0, %v1271_v25 }
  0x6e   :  { %1079 = vmatpush3.bf16.msra.mxu0 %v1172_v26 }
  0x6f   :  { %1080 = vmatprep.subr.bf16.mxu0 %v1271_v25 }
  0x72   :  { %1081 = vmatpush3.bf16.msra.mxu0 %v1173_v27 }
  0x73   :  { %1082 = vmatprep.subr.bf16.mxu0 %v1271_v25 }
  0x76   :  { %1083 = vmatpush3.bf16.msra.mxu0 %v1174_v28 }
  0x77   :  { %1084 = vmatprep.subr.bf16.mxu0 %v1271_v25 }
  0x7a   :  { %1085 = vmatpush3.bf16.msra.mxu0 %v1175_v29 }
  0x7b   :  { %1086 = vmatprep.subr.bf16.mxu0 %v1271_v25 }
  0x7e   :  { %1087 = vmatpush3.bf16.msra.mxu0 %v1176_v30 }
  0x7f   :  { %1088 = vmatprep.subr.bf16.mxu0 %v1271_v25 }
  0x82   :  { %1089 = vmatpush3.bf16.msra.mxu0 %v1177_v31 }
  0x83   :  { %1090 = vmatprep.subr.bf16.mxu0 %v1271_v25 }
  0x86   :  { %1091 = vmatpush3.bf16.msra.mxu0 %v1178_v32 }
 0x109   :  { %v995_v33 = vpop.f32.mrf.mxu0 }
 0x10a   :  { %v1017_v34 = vpop.f32.mrf.mxu1 }
 0x10b   :  { %v996_v35 = vpop.f32.mrf.mxu0 }
 0x10c   :  { %v1018_v36 = vpop.f32.mrf.mxu1  ;;  %v997_v38 = vadd.f32 %v996_v35, %v995_v33 }
 0x10d   :  { %v998_v37 = vpop.f32.mrf.mxu0  ;;  %v1019_v43 = vadd.f32 %v1018_v36, %v1017_v34 }
 0x10e   :  { %v1020_v39 = vpop.f32.mrf.mxu1  ;;  %v641_v42 = vadd.f32 %v997_v38, %v905_v40 }
 0x10f   :  { %v999_v41 = vpop.f32.mrf.mxu0 }
 0x110   :  { %v1000_v44 = vadd.f32 %v999_v41, %v998_v37  ;;  %v1021_v45 = vpop.f32.mrf.mxu1  ;;  %v682_v49 = vadd.f32 %v1019_v43, %v641_v42 }
 0x111   :  { %v1022_v54 = vadd.f32 %v1021_v45, %v1020_v39 }
 0x112   :  { %v644_v50 = vadd.f32 %v1000_v44, %v905_v40 }
 0x114   :  { %v685_v58 = vadd.f32 %v1022_v54, %v644_v50 }
 0x129   :  { %v1039_v46 = vpop.f32.mrf.mxu0 }
 0x12a   :  { %v1061_v47 = vpop.f32.mrf.mxu1 }
 0x12b   :  { %v1040_v48 = vpop.f32.mrf.mxu0 }
 0x12c   :  { %v1041_v51 = vadd.f32 %v1040_v48, %v1039_v46  ;;  %v1062_v52 = vpop.f32.mrf.mxu1 }
 0x12d   :  { %v1042_v53 = vpop.f32.mrf.mxu0  ;;  %v1063_v59 = vadd.f32 %v1062_v52, %v1061_v47 }
 0x12e   :  { %v723_v55 = vadd.f32 %v1041_v51, %v682_v49  ;;  %v1064_v56 = vpop.f32.mrf.mxu1 }
 0x12f   :  { %v1043_v57 = vpop.f32.mrf.mxu0 }
 0x130   :  { %v1044_v60 = vadd.f32 %v1043_v57, %v1042_v53  ;;  %v1065_v61 = vpop.f32.mrf.mxu1  ;;  %v764_v62 = vadd.f32 %v1063_v59, %v723_v55 }
 0x131   :  { %v1066_v0 = vadd.f32 %v1065_v61, %v1064_v56 }
 0x132   :  { %v726_v63 = vadd.f32 %v1044_v60, %v685_v58  ;;  %v770_v2 = vmax.f32 %v764_v62, 0.0 }
 0x134   :  { %v767_v1 = vadd.f32 %v1066_v0, %v726_v63 }
 0x136   :  { %v771_v3 = vmax.f32 %v767_v1, 0.0 }
 0x138   :  { %v772_v4 = vpack.c.bf16 %v771_v3, %v770_v2 }
 0x13a   :  { %1093 = vmatmul.mubr.bf16.vlgmr.msra.gmra.mxu0 %v772_v4 }
 0x1fa   :  { %v878_v6 = vpop.f32.mrf.mxu0 }
 0x1fb   :  { %v879_v7 = vadd.f32 %v970_v5, %v878_v6 }
 0x1fc   :  { %v1094_v8 = vpop.f32.mrf.mxu0 }
 0x1fd   :  { %885 = vst [vmem:[#allocation8] sm:$0xff] %v879_v7 }
 0x1fe   :  { %v881_v9 = vpop.f32.mrf.mxu0 }
 0x1ff   :  { %v882_v10 = vadd.f32 %v970_v5, %v881_v9 }
 0x200   :  { %v1095_v11 = vpop.f32.mrf.mxu0 }
 0x201   :  { %886 = vst [vmem:[#allocation8 + $0x8] sm:$0xff] %v882_v10 }
 0x202   :  { %1250 = shalt.err (!%p1247_p5)
}
 0x203   :  { %s1274_s14 = smov 128   ;;  %s1275_s4 = smov 8  }
 0x204   :  { %898 = dma.vmem_to_hbm [thread:$0]  %s893_s12, 256, %s1329_s5, [#allocation4], %s1274_s14, %s1274_s14, %s1275_s4  }
 0x205   :  { %1263 = dma.done.wait [#allocation4], 256  }
 0x206   :  { %1264 = vsyncadd [#allocation4], 4294967040 }
 0x207   :  { %902 = vsyncpa [#allocation3], 1 }
 0x208   :  { %903 = vsyncpa [#allocation6], 1 }
 0x209   :  { %904 = vsyncpa [#allocation4], 1 }

</bundles_post_ra>
